<compile_context>
chip_gen: v7x
topology: tpu7x:2x2x1
jax: 0.10.0
libtpu: 0.0.40
codegen_flags: <defaults>
</compile_context>

<pallas_src>
import jax
import jax.numpy as jnp
from jax.experimental import pallas as pl
from jax.experimental.pallas import tpu as pltpu

_LANES = 128  # boxes interleaved [x1, y1, x2, y2] * 32 along the lane axis


def fix_boxs_kernel(b_ref, o_ref):
    v = b_ref[...]                       # (R, 128), input dtype
    rows, lanes = v.shape
    lane = jax.lax.broadcasted_iota(jnp.int32, (rows, lanes), 1)

    def partner(w, dist):
        # Element `dist` lanes away inside its aligned group of 2*dist lanes.
        # roll(w, s)[j] = w[j - s]; wrap-around lanes are discarded by the mask.
        fwd = pltpu.roll(w, (-dist) % lanes, axis=1)   # w[:, j + dist]
        bwd = pltpu.roll(w, dist, axis=1)              # w[:, j - dist]
        return jnp.where((lane % (2 * dist)) < dist, fwd, bwd)

    # ---- step 1: boxes containing any NaN -> [0, 0, 1, 1] -----------------
    nf = jnp.isnan(v).astype(jnp.float32)
    nf = jnp.maximum(nf, partner(nf, 2))               # OR with coord 2 away
    nf = jnp.maximum(nf, partner(nf, 1))               # OR with coord 1 away
    has_nan = nf > 0.5                                 # per-box OR, all 4 lanes

    is_hi = (lane & 2) != 0                            # lanes holding x2 / y2
    default = jnp.where(is_hi, jnp.ones_like(v), jnp.zeros_like(v))
    v = jnp.where(has_nan, default, v)

    # ---- step 2: enforce x1 <= x2 and y1 <= y2 (swap if reversed) ---------
    p = partner(v, 2)                                  # the matching coordinate
    o_ref[...] = jnp.where(is_hi, jnp.maximum(v, p), jnp.minimum(v, p))


def fix_boxs(boxs, target_block_bytes=4 << 20):
    """boxs: (N, 4) float array -> (N, 4) fixed boxes."""
    n, c = boxs.shape
    assert c == 4
    dtype = boxs.dtype
    itemsize = jnp.dtype(dtype).itemsize

    n_elems = n * 4
    rows = pl.cdiv(n_elems, _LANES)
    padded_elems = rows * _LANES

    flat = boxs.reshape(-1)
    if padded_elems != n_elems:
        # Pad only to the next 128-element boundary (zeros are inert boxes).
        flat = jnp.pad(flat, (0, padded_elems - n_elems))
    x2d = flat.reshape(rows, _LANES)

    # Block sizing: multiple of 8 sublanes, ~target_block_bytes per block,
    # and >= 2 grid steps when possible (v7x megacore sharding).
    target_rows = max(8, target_block_bytes // (_LANES * itemsize))
    if rows <= 8:
        block_rows = rows                 # single full-extent block
    else:
        half = ((pl.cdiv(rows, 2) + 7) // 8) * 8
        block_rows = int(min(target_rows, half))
    grid = pl.cdiv(rows, block_rows)

    out2d = pl.pallas_call(
        fix_boxs_kernel,
        out_shape=jax.ShapeDtypeStruct((rows, _LANES), dtype),
        grid=(grid,),
        in_specs=[pl.BlockSpec((block_rows, _LANES), lambda i: (i, 0))],
        out_specs=pl.BlockSpec((block_rows, _LANES), lambda i: (i, 0)),
        compiler_params=pltpu.CompilerParams(
            dimension_semantics=("parallel",),
            vmem_limit_bytes=32 * 1024 * 1024),
    )(x2d)

    out_flat = out2d.reshape(-1)
    if padded_elems != n_elems:
        out_flat = out_flat[:n_elems]
    return out_flat.reshape(n, 4)


def fix_boxs_ref(boxs):
    # plain-JAX reference for validation
    row_has_nan = jnp.any(jnp.isnan(boxs), axis=-1, keepdims=True)
    default = jnp.array([0.0, 0.0, 1.0, 1.0], dtype=boxs.dtype)
    b = jnp.where(row_has_nan, default[None, :], boxs)
    x1, y1, x2, y2 = b[:, 0], b[:, 1], b[:, 2], b[:, 3]
    sx = x2 < x1
    sy = y2 < y1
    nx1 = jnp.where(sx, x2, x1)
    nx2 = jnp.where(sx, x1, x2)
    ny1 = jnp.where(sy, y2, y1)
    ny2 = jnp.where(sy, y1, y2)
    return jnp.stack([nx1, ny1, nx2, ny2], axis=-1)


if __name__ == "__main__":
    key = jax.random.PRNGKey(0)

    # test 1: small, single grid step, ragged (rows=1 < 8)
    N = 8
    boxs = jax.random.uniform(key, (N, 4), dtype=jnp.float32)
    boxs = boxs.at[1, 2].set(jnp.nan)                                        # NaN row
    boxs = boxs.at[3].set(jnp.array([0.9, 0.2, 0.1, 0.8], jnp.float32))      # x swapped
    boxs = boxs.at[5].set(jnp.array([0.1, 0.9, 0.8, 0.2], jnp.float32))      # y swapped
    boxs = boxs.at[6].set(jnp.array([0.7, 0.6, 0.3, 0.1], jnp.float32))      # both swapped

    out = fix_boxs(boxs)
    jax.block_until_ready(out)
    ref = fix_boxs_ref(boxs)
    assert out.shape == boxs.shape
    assert jnp.allclose(out, ref, atol=1e-6), (out, ref)
    assert not jnp.any(jnp.isnan(out))

    # test 2: N not a multiple of 32 -> padded flat + ragged last block, grid=2
    key2 = jax.random.PRNGKey(1)
    N2 = 300
    boxs2 = jax.random.uniform(key2, (N2, 4), dtype=jnp.float32) * 2.0 - 0.5
    boxs2 = boxs2.at[17, 0].set(jnp.nan)
    boxs2 = boxs2.at[255].set(jnp.array([0.8, 0.9, 0.1, 0.2], jnp.float32))
    out2 = fix_boxs(boxs2)
    jax.block_until_ready(out2)
    assert out2.shape == boxs2.shape
    assert jnp.allclose(out2, fix_boxs_ref(boxs2), atol=1e-6)
    assert not jnp.any(jnp.isnan(out2))

    # test 3: N multiple of 32 -> no padding, evenly dividing multi-step grid
    key3 = jax.random.PRNGKey(2)
    N3 = 512
    boxs3 = jax.random.uniform(key3, (N3, 4), dtype=jnp.float32) * 3.0 - 1.0
    boxs3 = boxs3.at[100, 3].set(jnp.nan)
    boxs3 = boxs3.at[511].set(jnp.array([0.9, 0.8, 0.1, 0.2], jnp.float32))
    out3 = fix_boxs(boxs3)
    jax.block_until_ready(out3)
    assert out3.shape == boxs3.shape
    assert jnp.allclose(out3, fix_boxs_ref(boxs3), atol=1e-6)
    assert not jnp.any(jnp.isnan(out3))

    print("KERNEL_OK")
</pallas_src>

<mosaic_0001>
module attributes {stable_mosaic.version = 11 : i64} {
  func.func @fix_boxs_kernel(%arg0: i32, %arg1: memref<1x128xf32, #tpu.memory_space<vmem>>, %arg2: memref<1x128xf32, #tpu.memory_space<vmem>>) attributes {dimension_semantics = [#tpu.dimension_semantics<parallel>], iteration_bounds = array<i64: 1>, scalar_prefetch = 0 : i64, scratch_operands = 0 : i64, tpu.core_type = #tpu.core_type<tc>, window_params = [{transform_indices = @transform_0, window_bounds = array<i64: 1, 128>}, {transform_indices = @transform_1, window_bounds = array<i64: 1, 128>}]} {
    %c0 = arith.constant 0 : index
    %c0_0 = arith.constant 0 : index
    %0 = vector.load %arg1[%c0, %c0_0] : memref<1x128xf32, #tpu.memory_space<vmem>>, vector<1x128xf32>
    %1 = tpu.iota {dimensions = array<i32: 1>} : vector<1x128xi32>
    %2 = arith.cmpf one, %0, %0 : vector<1x128xf32>
    %3 = arith.extui %2 : vector<1x128xi1> to vector<1x128xi32>
    %4 = arith.sitofp %3 : vector<1x128xi32> to vector<1x128xf32>
    %c126_i32 = arith.constant 126 : i32
    %5 = tpu.dynamic_rotate %4 by %c126_i32 dim 1 : vector<1x128xf32>, i32 -> vector<1x128xf32>
    %c2_i32 = arith.constant 2 : i32
    %6 = tpu.dynamic_rotate %4 by %c2_i32 dim 1 : vector<1x128xf32>, i32 -> vector<1x128xf32>
    %c4_i32 = arith.constant 4 : i32
    %c0_i32 = arith.constant 0 : i32
    %7 = arith.cmpi eq, %c4_i32, %c0_i32 : i32
    %c1_i32 = arith.constant 1 : i32
    %8 = arith.select %7, %c1_i32, %c4_i32 : i32
    %9 = vector.broadcast %8 : i32 to vector<1x128xi32>
    %10 = arith.remsi %1, %9 : vector<1x128xi32>
    %c0_i32_1 = arith.constant 0 : i32
    %11 = vector.broadcast %c0_i32_1 : i32 to vector<1x128xi32>
    %12 = arith.cmpi ne, %10, %11 : vector<1x128xi32>
    %c0_i32_2 = arith.constant 0 : i32
    %13 = vector.broadcast %c0_i32_2 : i32 to vector<1x128xi32>
    %14 = arith.cmpi slt, %10, %13 : vector<1x128xi32>
    %c0_i32_3 = arith.constant 0 : i32
    %15 = arith.cmpi slt, %8, %c0_i32_3 : i32
    %16 = vector.broadcast %15 : i1 to vector<1x128xi1>
    %17 = vector.broadcast %16 : vector<1x128xi1> to vector<1x128xi1>
    %18 = arith.xori %14, %17 : vector<1x128xi1>
    %19 = arith.andi %18, %12 : vector<1x128xi1>
    %20 = vector.broadcast %8 : i32 to vector<1x128xi32>
    %21 = arith.addi %10, %20 : vector<1x128xi32>
    %22 = arith.select %19, %21, %10 : vector<1x128xi1>, vector<1x128xi32>
    %c2_i32_4 = arith.constant 2 : i32
    %23 = vector.broadcast %c2_i32_4 : i32 to vector<1x128xi32>
    %24 = arith.cmpi slt, %22, %23 : vector<1x128xi32>
    %25 = arith.select %24, %5, %6 : vector<1x128xi1>, vector<1x128xf32>
    %26 = arith.maximumf %4, %25 : vector<1x128xf32>
    %c127_i32 = arith.constant 127 : i32
    %27 = tpu.dynamic_rotate %26 by %c127_i32 dim 1 : vector<1x128xf32>, i32 -> vector<1x128xf32>
    %c1_i32_5 = arith.constant 1 : i32
    %28 = tpu.dynamic_rotate %26 by %c1_i32_5 dim 1 : vector<1x128xf32>, i32 -> vector<1x128xf32>
    %c2_i32_6 = arith.constant 2 : i32
    %c0_i32_7 = arith.constant 0 : i32
    %29 = arith.cmpi eq, %c2_i32_6, %c0_i32_7 : i32
    %c1_i32_8 = arith.constant 1 : i32
    %30 = arith.select %29, %c1_i32_8, %c2_i32_6 : i32
    %31 = vector.broadcast %30 : i32 to vector<1x128xi32>
    %32 = arith.remsi %1, %31 : vector<1x128xi32>
    %c0_i32_9 = arith.constant 0 : i32
    %33 = vector.broadcast %c0_i32_9 : i32 to vector<1x128xi32>
    %34 = arith.cmpi ne, %32, %33 : vector<1x128xi32>
    %c0_i32_10 = arith.constant 0 : i32
    %35 = vector.broadcast %c0_i32_10 : i32 to vector<1x128xi32>
    %36 = arith.cmpi slt, %32, %35 : vector<1x128xi32>
    %c0_i32_11 = arith.constant 0 : i32
    %37 = arith.cmpi slt, %30, %c0_i32_11 : i32
    %38 = vector.broadcast %37 : i1 to vector<1x128xi1>
    %39 = vector.broadcast %38 : vector<1x128xi1> to vector<1x128xi1>
    %40 = arith.xori %36, %39 : vector<1x128xi1>
    %41 = arith.andi %40, %34 : vector<1x128xi1>
    %42 = vector.broadcast %30 : i32 to vector<1x128xi32>
    %43 = arith.addi %32, %42 : vector<1x128xi32>
    %44 = arith.select %41, %43, %32 : vector<1x128xi1>, vector<1x128xi32>
    %c1_i32_12 = arith.constant 1 : i32
    %45 = vector.broadcast %c1_i32_12 : i32 to vector<1x128xi32>
    %46 = arith.cmpi slt, %44, %45 : vector<1x128xi32>
    %47 = arith.select %46, %27, %28 : vector<1x128xi1>, vector<1x128xf32>
    %48 = arith.maximumf %26, %47 : vector<1x128xf32>
    %cst = arith.constant 5.000000e-01 : f32
    %49 = vector.broadcast %cst : f32 to vector<1x128xf32>
    %50 = arith.cmpf ogt, %48, %49 : vector<1x128xf32>
    %c2_i32_13 = arith.constant 2 : i32
    %51 = vector.broadcast %c2_i32_13 : i32 to vector<1x128xi32>
    %52 = arith.andi %1, %51 : vector<1x128xi32>
    %c0_i32_14 = arith.constant 0 : i32
    %53 = vector.broadcast %c0_i32_14 : i32 to vector<1x128xi32>
    %54 = arith.cmpi ne, %52, %53 : vector<1x128xi32>
    %cst_15 = arith.constant 1.000000e+00 : f32
    %55 = vector.broadcast %cst_15 : f32 to vector<1x128xf32>
    %cst_16 = arith.constant 0.000000e+00 : f32
    %56 = vector.broadcast %cst_16 : f32 to vector<1x128xf32>
    %57 = arith.select %54, %55, %56 : vector<1x128xi1>, vector<1x128xf32>
    %58 = arith.select %50, %57, %0 : vector<1x128xi1>, vector<1x128xf32>
    %c126_i32_17 = arith.constant 126 : i32
    %59 = tpu.dynamic_rotate %58 by %c126_i32_17 dim 1 : vector<1x128xf32>, i32 -> vector<1x128xf32>
    %c2_i32_18 = arith.constant 2 : i32
    %60 = tpu.dynamic_rotate %58 by %c2_i32_18 dim 1 : vector<1x128xf32>, i32 -> vector<1x128xf32>
    %c4_i32_19 = arith.constant 4 : i32
    %c0_i32_20 = arith.constant 0 : i32
    %61 = arith.cmpi eq, %c4_i32_19, %c0_i32_20 : i32
    %c1_i32_21 = arith.constant 1 : i32
    %62 = arith.select %61, %c1_i32_21, %c4_i32_19 : i32
    %63 = vector.broadcast %62 : i32 to vector<1x128xi32>
    %64 = arith.remsi %1, %63 : vector<1x128xi32>
    %c0_i32_22 = arith.constant 0 : i32
    %65 = vector.broadcast %c0_i32_22 : i32 to vector<1x128xi32>
    %66 = arith.cmpi ne, %64, %65 : vector<1x128xi32>
    %c0_i32_23 = arith.constant 0 : i32
    %67 = vector.broadcast %c0_i32_23 : i32 to vector<1x128xi32>
    %68 = arith.cmpi slt, %64, %67 : vector<1x128xi32>
    %c0_i32_24 = arith.constant 0 : i32
    %69 = arith.cmpi slt, %62, %c0_i32_24 : i32
    %70 = vector.broadcast %69 : i1 to vector<1x128xi1>
    %71 = vector.broadcast %70 : vector<1x128xi1> to vector<1x128xi1>
    %72 = arith.xori %68, %71 : vector<1x128xi1>
    %73 = arith.andi %72, %66 : vector<1x128xi1>
    %74 = vector.broadcast %62 : i32 to vector<1x128xi32>
    %75 = arith.addi %64, %74 : vector<1x128xi32>
    %76 = arith.select %73, %75, %64 : vector<1x128xi1>, vector<1x128xi32>
    %c2_i32_25 = arith.constant 2 : i32
    %77 = vector.broadcast %c2_i32_25 : i32 to vector<1x128xi32>
    %78 = arith.cmpi slt, %76, %77 : vector<1x128xi32>
    %79 = arith.select %78, %59, %60 : vector<1x128xi1>, vector<1x128xf32>
    %80 = arith.maximumf %58, %79 : vector<1x128xf32>
    %81 = arith.minimumf %58, %79 : vector<1x128xf32>
    %82 = arith.select %54, %80, %81 : vector<1x128xi1>, vector<1x128xf32>
    %c0_26 = arith.constant 0 : index
    %c0_27 = arith.constant 0 : index
    %83 = vector.load %arg2[%c0_26, %c0_27] : memref<1x128xf32, #tpu.memory_space<vmem>>, vector<1x128xf32>
    tpu.vector_store %arg2[%c0_26, %c0_27], %82 {strides = array<i32>} : memref<1x128xf32, #tpu.memory_space<vmem>>, vector<1x128xf32>,
    return
  }
  func.func @transform_0(%arg0: i32) -> (i32, i32) {
    %c0_i32 = arith.constant 0 : i32
    %c0_i32_0 = arith.constant 0 : i32
    return %arg0, %c0_i32 : i32, i32
  }
  func.func @transform_1(%arg0: i32) -> (i32, i32) {
    %c0_i32 = arith.constant 0 : i32
    %c0_i32_0 = arith.constant 0 : i32
    return %arg0, %c0_i32 : i32, i32
  }
}

</mosaic_0001>

<bundles_post_ra>
// kernel: tpu_custom_call.1
= control target key start
LH: loop header
LB: loop body
LE: loop exit
PB: predicated region body
PF: predicated region fallthrough
CT: control target
= control target key end

     0   :  { %6 = vsyncpa [#allocation3], 0  ;;  %s207_s0 = inlined_call_operand.hbm [shape: f32[1,128], index: 0, kind: input, shape index: {}]   ;;  %s208_s1 = inlined_call_operand.hbm [shape: f32[1,128], index: 1, kind: output, shape index: {}]  }
   0x1   :  { %7 = vsyncpa [#allocation4], 0  ;;  %s150_s6 = smov [#allocation2]   ;;  %s102_s10 = scalar_lea.hbm %s207_s0, 16 }
   0x2   :  { %s14_s7 = sshll.u32 %s150_s6, 4  ;;  %p103_p0 = scmp.ne.s32.totalorder %s207_s0, %s102_s10  ;;  %s15_s7 = int_to_ptr.vmem [resolvable:$true] %s14_s7 }
   0x3   :  { %p106_p1 = scmp.lt.u32.totalorder %s102_s10, %s207_s0 }
   0x5   :  { %p108_p2 = pnand %p106_p1, %p103_p0 }
   0x7   :  { %111 = shalt.err (!%p108_p2)
}
   0x8   :  { %s112_s15 = scalar_lea.vmem %s15_s7, 16  ;;  %s116_s16 = scalar_lea.vmem %s15_s7, 32 }
   0x9   :  { %p113_p3 = scmp.ne.s32.totalorder %s15_s7, %s112_s15  ;;  %p117_p4 = scmp.lt.s32.totalorder %s15_s7, %s15_s7 }
   0xa   :  { %p118_p5 = scmp.lt.s32.totalorder %s116_s16, %s112_s15 }
   0xc   :  { %p119_p6 = por %p118_p5, %p117_p4 }
   0xe   :  { %p120_p7 = pnand %p119_p6, %p113_p3 }
  0x10   :  { %123 = shalt.err (!%p120_p7)
}
  0x11   :  { %17 = dma.hbm_to_vmem [thread:$0]  %s207_s0, 16, %s15_s7, [#allocation3]  }
  0x12   :  { %146 = dma.done.wait [#allocation3], 16  }
  0x13   :  { %147 = vsyncadd [#allocation3], 4294967280  ;;  %v21_v0 = vld [vmem:[#allocation2] sm:$0x1]  ;;  %v151_v1 = vmov 0.0   ;;  %s152_s19 = smov 126   ;;  %v22_v3 = vlaneseq }
  0x14   :  { %vm24_vm0 = vcmp.ne.f32.partialorder %v21_v0, %v21_v0  ;;  %s153_s20 = smov 2   ;;  %s154_s0 = smov 127  }
  0x15   :  { %v94_v2 = vsel %vm24_vm0, 1.0, %v151_v1  ;;  %v23_v4 = vand.u32 127, %v22_v3  ;;  %s155_s21 = smov 1   ;;  %s156_s22 = smov [#allocation5]  }
  0x16   :  { %27 = vrot.lane.b32.xlu0 %v94_v2, %s152_s19  ;;  %s85_s23 = sshll.u32 %s156_s22, 4  ;;  %s86_s23 = int_to_ptr.vmem [resolvable:$true] %s85_s23 }
  0x17   :  { %v35_v5 = vand.u32 3, %v23_v4  ;;  %v54_v11 = vand.u32 1, %v23_v4  ;;  %v66_v12 = vand.u32 2, %v23_v4  ;;  %s124_s24 = scalar_lea.vmem %s86_s23, 16  ;;  %s128_s25 = scalar_lea.vmem %s86_s23, 32 }
  0x18   :  { %p125_p8 = scmp.ne.s32.totalorder %s86_s23, %s124_s24  ;;  %p129_p9 = scmp.lt.s32.totalorder %s86_s23, %s86_s23 }
  0x19   :  { %vm179_vm1 = vcmp.lt.s32.totalorder %v35_v5, 2  ;;  %vm62_vm2 = vcmp.lt.s32.totalorder %v54_v11, 1  ;;  %vm185_vm3 = vcmp.ne.s32.totalorder %v66_v12, 0  ;;  %p130_p10 = scmp.lt.s32.totalorder %s128_s25, %s124_s24 }
  0x1a   :  { %29 = vrot.lane.b32.xlu0 %v94_v2, %s153_s20  ;;  %v68_v17 = vsel %vm185_vm3, 1.0, %v151_v1 }
  0x1b   :  { %p131_p11 = por %p130_p10, %p129_p9 }
  0x1d   :  { %p132_p12 = pnand %p131_p11, %p125_p8 }
  0x88   :  { %v28_v6 = vpop.permute.xlu0 %27 }
  0x8c   :  { %v30_v8 = vpop.permute.xlu0 %29 }
  0x8d   :  { %v44_v9 = vsel %vm179_vm1, %v28_v6, %v30_v8 }
  0x8e   :  { %v45_v10 = vmax.f32 %v94_v2, %v44_v9 }
  0x90   :  { %46 = vrot.lane.b32.xlu1 %v45_v10, %s154_s0 }
  0x94   :  { %48 = vrot.lane.b32.xlu1 %v45_v10, %s155_s21 }
 0x102   :  { %v47_v13 = vpop.permute.xlu1 %46 }
 0x106   :  { %v49_v15 = vpop.permute.xlu1 %48 }
 0x107   :  { %v63_v16 = vsel %vm62_vm2, %v47_v13, %v49_v15 }
 0x108   :  { %v64_v18 = vmax.f32 %v45_v10, %v63_v16 }
 0x10a   :  { %vm65_vm4 = vcmp.gt.f32.partialorder %v64_v18, 0.5 }
 0x10b   :  { %v69_v19 = vsel %vm65_vm4, %v68_v17, %v21_v0 }
 0x10c   :  { %72 = vrot.lane.b32.xlu1 %v69_v19, %s153_s20  ;;  %70 = vrot.lane.b32.xlu0 %v69_v19, %s152_s19 }
 0x17e   :  { %v73_v20 = vpop.permute.xlu1 %72  ;;  %v71_v21 = vpop.permute.xlu0 %70 }
 0x17f   :  { %v74_v22 = vsel %vm179_vm1, %v71_v21, %v73_v20 }
 0x180   :  { %v75_v23 = vmax.f32 %v69_v19, %v74_v22  ;;  %v76_v24 = vmin.f32 %v69_v19, %v74_v22 }
 0x182   :  { %v77_v25 = vsel %vm185_vm3, %v75_v23, %v76_v24 }
 0x183   :  { %78 = vst [vmem:[#allocation5] sm:$0x1] %v77_v25 }
 0x184   :  { %135 = shalt.err (!%p132_p12)
}
 0x185   :  { %s136_s28 = scalar_lea.hbm %s208_s1, 16 }
 0x186   :  { %p137_p13 = scmp.ne.s32.totalorder %s208_s1, %s136_s28  ;;  %p140_p0 = scmp.lt.u32.totalorder %s136_s28, %s208_s1 }
 0x188   :  { %p142_p1 = pnand %p140_p0, %p137_p13 }
 0x18a   :  { %145 = shalt.err (!%p142_p1)
}
 0x18b   :  { %88 = dma.vmem_to_hbm [thread:$0]  %s86_s23, 16, %s208_s1, [#allocation4]  }
 0x18c   :  { %148 = dma.done.wait [#allocation4], 16  }
 0x18d   :  { %149 = vsyncadd [#allocation4], 4294967280 }
 0x18e   :  { %92 = vsyncpa [#allocation3], 1 }
 0x18f   :  { %93 = vsyncpa [#allocation4], 1 }

</bundles_post_ra>
